<compile_context>
chip_gen: v5e
topology: v5e:2x2
jax: 0.10.0
libtpu: 0.0.40
codegen_flags: <defaults>
</compile_context>

<pallas_src>
import jax
import jax.numpy as jnp
from jax.experimental import pallas as pl
from jax.experimental.pallas import tpu as pltpu

_LANES = 128      # lane width of a vreg
_SUBLANES = 8     # sublane height of a vreg


def _lr_kernel(wb_ref, x_ref, o_ref):
    # wb_ref: SMEM f32[3] = [w0, w1, b]
    # x_ref:  VMEM f32[2, block_rows, 128]   (feature-major, batch lane-dense)
    # o_ref:  VMEM f32[block_rows, 128]
    w0 = wb_ref[0]
    w1 = wb_ref[1]
    b = wb_ref[2]
    z = x_ref[0] * w0 + x_ref[1] * w1 + b      # pure VPU, scalar broadcasts
    o_ref[...] = jax.nn.sigmoid(z)             # exp / reciprocal on the EUP slot


def _auto_tiling():
    """Return (tile_rows, vmem_limit_bytes) tuned per TPU generation."""
    try:
        vmem_cap = pltpu.get_tpu_info().vmem_capacity_bytes
    except Exception:           # conservative fallback (interpret mode, etc.)
        return 2048, None
    if vmem_cap is None:
        return 2048, None
    if (56 << 20) <= vmem_cap < (96 << 20):
        # v7x-class: 64 MiB physical VMEM per TC, highest per-TC HBM BW.
        # 8192-row tiles = 24 MiB double-buffered; cap scoped VMEM at 48 MiB.
        return 8192, 48 << 20
    # v5e / v6e (128 MiB physical): 2048-row tiles = 6 MiB double-buffered,
    # fits the 16 MiB (v5e) / 32 MiB (v6e) default scoped limits with headroom.
    return 2048, None


def lr_forward(x, weight, bias, *, tile_rows=None):
    """x: [N, 2] f32, weight: [1, 2] f32, bias: [1] f32 -> [N, 1] f32."""
    n, in_f = x.shape
    assert in_f == 2, "Model is Linear(2, 1)"
    x = x.astype(jnp.float32)

    if tile_rows is None:
        tile_rows, vmem_limit = _auto_tiling()
    else:
        vmem_limit = None

    # Lane-dense layout: batch element i lives at [i // 128, i % 128].
    # Rows are padded only to a multiple of 8 (sublane); the last grid tile may
    # be ragged — Pallas masks its out-of-bounds reads/writes.
    rows = -(-n // _LANES)
    rows_pad = -(-rows // _SUBLANES) * _SUBLANES
    n_pad = rows_pad * _LANES

    if rows_pad <= tile_rows:
        block_rows = rows_pad            # single full-extent block
    else:
        block_rows = tile_rows           # multiple of 8 -> valid sublane tiling
    num_tiles = -(-rows_pad // block_rows)

    # One fused pad + transpose pass on the host -> a single [2, rows, 128]
    # feature-major input stream.  Padded batch entries are zeros; their
    # sigmoid(b) output is discarded by the final slice.
    if n_pad != n:
        x = jnp.pad(x, ((0, n_pad - n), (0, 0)))
    xt = x.T.reshape(2, rows_pad, _LANES)

    # Weight + bias as 3 scalars in SMEM.
    wb = jnp.concatenate([weight.reshape(-1), bias.reshape(-1)]).astype(jnp.float32)

    out = pl.pallas_call(
        _lr_kernel,
        out_shape=jax.ShapeDtypeStruct((rows_pad, _LANES), jnp.float32),
        grid=(num_tiles,),
        in_specs=[
            pl.BlockSpec(memory_space=pltpu.MemorySpace.SMEM),              # wb
            pl.BlockSpec((2, block_rows, _LANES), lambda i: (0, i, 0)),     # xt
        ],
        out_specs=pl.BlockSpec((block_rows, _LANES), lambda i: (i, 0)),
        compiler_params=pltpu.CompilerParams(
            dimension_semantics=("parallel",),   # shard batch tiles across TCs
            vmem_limit_bytes=vmem_limit,
        ),
    )(wb, xt)

    # Back to PyTorch's [N, 1] output shape (layout plumbing only; callers that
    # can consume the padded lane-dense buffer should take `out` directly).
    return out.reshape(n_pad, 1)[:n]


if __name__ == "__main__":
    key = jax.random.PRNGKey(0)
    kx, kw, kb = jax.random.split(key, 3)

    N, IN_F, OUT_F = 8, 2, 1
    x = jax.random.normal(kx, (N, IN_F), dtype=jnp.float32)

    # Deterministic init mimicking torch.nn.Linear: U(-1/sqrt(in), 1/sqrt(in))
    bound = 1.0 / jnp.sqrt(jnp.float32(IN_F))
    weight = jax.random.uniform(kw, (OUT_F, IN_F), minval=-bound, maxval=bound,
                                dtype=jnp.float32)
    bias = jax.random.uniform(kb, (OUT_F,), minval=-bound, maxval=bound,
                              dtype=jnp.float32)

    # Small case (single block, auto tiling / per-generation probe).
    y = jax.block_until_ready(lr_forward(x, weight, bias))
    y_ref = jax.nn.sigmoid(x @ weight.T + bias)
    assert y.shape == (N, 1)
    assert jnp.allclose(y, y_ref, atol=1e-6), (y, y_ref)

    # Multi-tile + ragged-last-block path with a non-aligned N and an explicit
    # tile size (deterministic regardless of which chip auto-tiling picks).
    N2 = 2 * 1024 * _LANES + 300
    x2 = jax.random.normal(kx, (N2, IN_F), dtype=jnp.float32)
    y2 = jax.block_until_ready(lr_forward(x2, weight, bias, tile_rows=1024))
    y2_ref = jax.nn.sigmoid(x2 @ weight.T + bias)
    assert y2.shape == (N2, 1)
    assert jnp.allclose(y2, y2_ref, atol=1e-6)

    print("KERNEL_OK")
</pallas_src>

<mosaic_0001>
module attributes {stable_mosaic.version = 11 : i64} {
  func.func @_lr_kernel(%arg0: i32, %arg1: memref<3xf32, #tpu.memory_space<smem>>, %arg2: memref<2x8x128xf32, #tpu.memory_space<vmem>>, %arg3: memref<8x128xf32, #tpu.memory_space<vmem>>) attributes {dimension_semantics = [#tpu.dimension_semantics<parallel>], iteration_bounds = array<i64: 1>, scalar_prefetch = 0 : i64, scratch_operands = 0 : i64, tpu.core_type = #tpu.core_type<tc>, window_params = [{transform_indices = @transform_0, window_bounds = array<i64: 3>}, {transform_indices = @transform_1, window_bounds = array<i64: 2, 8, 128>}, {transform_indices = @transform_2, window_bounds = array<i64: 8, 128>}]} {
    %c0 = arith.constant 0 : index
    %0 = memref.load %arg1[%c0] : memref<3xf32, #tpu.memory_space<smem>>
    %c1 = arith.constant 1 : index
    %1 = memref.load %arg1[%c1] : memref<3xf32, #tpu.memory_space<smem>>
    %c2 = arith.constant 2 : index
    %2 = memref.load %arg1[%c2] : memref<3xf32, #tpu.memory_space<smem>>
    %c0_0 = arith.constant 0 : index
    %c0_1 = arith.constant 0 : index
    %c0_2 = arith.constant 0 : index
    %3 = vector.load %arg2[%c0_0, %c0_1, %c0_2] : memref<2x8x128xf32, #tpu.memory_space<vmem>>, vector<1x8x128xf32>
    %4 = vector.shape_cast %3 : vector<1x8x128xf32> to vector<8x128xf32>
    %5 = vector.broadcast %0 : f32 to vector<8x128xf32>
    %6 = arith.mulf %4, %5 : vector<8x128xf32>
    %c1_3 = arith.constant 1 : index
    %c0_4 = arith.constant 0 : index
    %c0_5 = arith.constant 0 : index
    %7 = vector.load %arg2[%c1_3, %c0_4, %c0_5] : memref<2x8x128xf32, #tpu.memory_space<vmem>>, vector<1x8x128xf32>
    %8 = vector.shape_cast %7 : vector<1x8x128xf32> to vector<8x128xf32>
    %9 = vector.broadcast %1 : f32 to vector<8x128xf32>
    %10 = arith.mulf %8, %9 : vector<8x128xf32>
    %11 = arith.addf %6, %10 : vector<8x128xf32>
    %12 = vector.broadcast %2 : f32 to vector<8x128xf32>
    %13 = arith.addf %11, %12 : vector<8x128xf32>
    %14 = arith.negf %13 : vector<8x128xf32>
    %15 = math.exp %14 : vector<8x128xf32>
    %cst = arith.constant 1.000000e+00 : f32
    %16 = vector.broadcast %cst : f32 to vector<8x128xf32>
    %17 = arith.addf %16, %15 : vector<8x128xf32>
    %18 = arith.divf %16, %17 : vector<8x128xf32>
    %c0_6 = arith.constant 0 : index
    %c0_7 = arith.constant 0 : index
    %19 = vector.load %arg3[%c0_6, %c0_7] : memref<8x128xf32, #tpu.memory_space<vmem>>, vector<8x128xf32>
    tpu.vector_store %arg3[%c0_6, %c0_7], %18 {strides = array<i32>} : memref<8x128xf32, #tpu.memory_space<vmem>>, vector<8x128xf32>,
    return
  }
  func.func @transform_0(%arg0: i32) -> i32 {
    %c0_i32 = arith.constant 0 : i32
    %c0_i32_0 = arith.constant 0 : i32
    return %c0_i32 : i32
  }
  func.func @transform_1(%arg0: i32) -> (i32, i32, i32) {
    %c0_i32 = arith.constant 0 : i32
    %c0_i32_0 = arith.constant 0 : i32
    %c0_i32_1 = arith.constant 0 : i32
    return %c0_i32, %arg0, %c0_i32_0 : i32, i32, i32
  }
  func.func @transform_2(%arg0: i32) -> (i32, i32) {
    %c0_i32 = arith.constant 0 : i32
    %c0_i32_0 = arith.constant 0 : i32
    return %arg0, %c0_i32 : i32, i32
  }
}

</mosaic_0001>

<bundles_post_ra>
// kernel: tpu_custom_call.1
= control target key start
LH: loop header
LB: loop body
LE: loop exit
PB: predicated region body
PF: predicated region fallthrough
CT: control target
= control target key end

     0   :  { %7 = vsyncpa [#allocation5], 0  ;;  %s199_s0 = inlined_call_operand.hbm [shape: f32[3], index: 0, kind: input, shape index: {}]   ;;  %s200_s1 = inlined_call_operand.hbm [shape: f32[2,8,128], index: 1, kind: input, shape index: {}]   ;;  %s201_s2 = inlined_call_operand.hbm [shape: f32[8,128], index: 2, kind: output, shape index: {}]  }
   0x1   :  { %8 = vsyncpa [#allocation3], 0 }
   0x2   :  { %9 = vsyncpa [#allocation4], 0  ;;  %s15_s11 = sshll.u32 %s199_s0, 4  ;;  %s23_s14 = sshll.u32 %s200_s1, 4  ;;  %s16_s11 = int_to_ptr.hbm [resolvable:$true] %s15_s11  ;;  %s24_s14 = int_to_ptr.hbm [resolvable:$true] %s23_s14 }
   0x3   :  { %s170_s15 = smov [#allocation2]   ;;  %s171_s16 = smov [#allocation6]  }
   0x4   :  { %18 = dma.hbm_to_smem %s16_s11, 16, %s170_s15, [#allocation5]  }
   0x5   :  { %s25_s17 = sshll.u32 %s171_s16, 4  ;;  %s172_s18 = smov 128   ;;  %s26_s17 = int_to_ptr.vmem [resolvable:$true] %s25_s17 }
   0x6   :  { %s173_s19 = smov 8  }
   0x7   :  { %31 = dma.hbm_to_vmem [thread:$0]  %s24_s14, 256, %s26_s17, [#allocation3], %s172_s18, %s172_s18, %s173_s19  }
   0x8   :  { %164 = dma.done.wait [#allocation5], 16  }
   0x9   :  { %165 = vsyncadd [#allocation5], 4294967280 }
   0xa   :  { %166 = dma.done.wait [#allocation3], 256  }
   0xb   :  { %167 = vsyncadd [#allocation3], 4294967040 }
   0xc   :  { %40 = sfence }
   0xd   :  { %s41_s0 = sld [smem:[#allocation2]]  ;;  %v44_v0 = vld [vmem:[#allocation6] sm:$0xff]  ;;  %v48_v1 = vld [vmem:[#allocation6 + $0x8] sm:$0xff]  ;;  %s174_s1 = smov [#allocation7]  }
   0xe   :  { %s92_s20 = sld [smem:[#allocation2 + $0x1]]  ;;  %s79_s22 = sshll.u32 %s174_s1, 4  ;;  %s80_s22 = int_to_ptr.vmem [resolvable:$true] %s79_s22 }
   0xf   :  { %s93_s21 = sld [smem:[#allocation2 + $0x2]]  ;;  %s81_s25 = sshll.u32 %s201_s2, 4  ;;  %s82_s25 = int_to_ptr.hbm [resolvable:$true] %s81_s25 }
  0x13   :  { %v45_v2 = vstv %s41_s0 }
  0x14   :  { %v46_v3 = vmul.f32 %v45_v2, %v44_v0  ;;  %v49_v4 = vstv %s92_s20 }
  0x15   :  { %v50_v5 = vmul.f32 %v49_v4, %v48_v1  ;;  %v52_v6 = vstv %s93_s21 }
  0x17   :  { %v51_v7 = vadd.f32 %v50_v5, %v46_v3 }
  0x19   :  { %v53_v8 = vadd.f32 %v52_v6, %v51_v7 }
  0x1b   :  { %v94_v9 = vmul.f32 -1.442695, %v53_v8 }
  0x1d   :  { %100 = vpow2.f32 %v94_v9 }
  0x23   :  { %v101_v10 = vpop.eup %100 }
  0x24   :  { %v57_v11 = vadd.f32 1.0, %v101_v10 }
  0x26   :  { %102 = vrcp.f32 %v57_v11  ;;  %v69_v14 = vand.u32 2147483648, %v57_v11  ;;  %vm63_vm0 = vweird.f32 %v57_v11  ;;  %v67_v16 = vand.u32 2147483647, %v57_v11 }
  0x28   :  { %v70_v18 = vor.u32 1.1754944e-38, %v69_v14  ;;  %vm68_vm3 = vcmp.eq.f32.partialorder %v67_v16, 8.507059e+37 }
  0x2c   :  { %v103_v12 = vpop.eup %102 }
  0x2d   :  { %v59_v13 = vmul.f32 %v103_v12, %v57_v11  ;;  %vm64_vm1 = vweird.f32 %v103_v12 }
  0x2e   :  { %vm65_vm2 = vmor %vm63_vm0, %vm64_vm1 }
  0x2f   :  { %v60_v15 = vsub.f32 1.0, %v59_v13 }
  0x31   :  { %v61_v17 = vmul.f32 %v103_v12, %v60_v15 }
  0x33   :  { %v62_v19 = vadd.f32 %v103_v12, %v61_v17 }
  0x35   :  { %v66_v20 = vsel %vm65_vm2, %v103_v12, %v62_v19 }
  0x36   :  { %v71_v21 = vsel %vm68_vm3, %v70_v18, %v66_v20 }
  0x37   :  { %73 = vst [vmem:[#allocation7] sm:$0xff] %v71_v21 }
  0x38   :  { %84 = dma.vmem_to_hbm [thread:$0]  %s80_s22, 128, %s82_s25, [#allocation4]  }
  0x39   :  { %168 = dma.done.wait [#allocation4], 128  }
  0x3a   :  { %169 = vsyncadd [#allocation4], 4294967168 }
  0x3b   :  { %89 = vsyncpa [#allocation3], 1 }
  0x3c   :  { %90 = vsyncpa [#allocation4], 1 }
  0x3d   :  { %91 = vsyncpa [#allocation5], 1 }

</bundles_post_ra>
